<compile_context>
chip_gen: v6e
topology: v6e:2x2x1
jax: 0.10.0
libtpu: 0.0.40
codegen_flags: <defaults>
</compile_context>

<pallas_src>
import functools

import jax
import jax.numpy as jnp
from jax.experimental import pallas as pl
from jax.experimental.pallas import tpu as pltpu

# Scoped-VMEM request: raises v5e's 16 MiB default, matches v6e/v7x defaults, and stays
# well under every chip's physical VMEM (v7x has 64 MiB total).
_VMEM_LIMIT_BYTES = 32 * 1024 * 1024


# ---------------------------------------------------------------------------
# tile pickers (respect the "last two block dims divisible by (8,128) or full"
# rule; budgets model the real per-step VMEM footprint incl. double buffers)
# ---------------------------------------------------------------------------
def _pick_stats_tile(n_rows, n_cols, itemsize, target_bytes=6 << 20):
    cands = [d for d in range(1, n_rows + 1)
             if n_rows % d == 0 and (d % 8 == 0 or d == n_rows)]
    fitting = [d for d in cands if d * n_cols * itemsize <= target_bytes]
    return max(fitting) if fitting else min(cands)


def _pick_outer_split(n_tiles, batch, max_par=8):
    """Split the L-tile axis into (outer 'parallel', inner 'arbitrary') so that
    B*outer >= ~max_par, giving the megacore something to shard when B is small."""
    want = max(1, max_par // max(batch, 1))
    best = 1
    for d in range(1, n_tiles + 1):
        if n_tiles % d == 0 and d <= want:
            best = d
    return best


def _pick_merge_tile(hh, wh, c, itemsize_in, itemsize_out, target_bytes=16 << 20):
    c2 = 2 * c
    c2out = 2 * c
    cands = [t for t in range(1, hh + 1)
             if hh % t == 0 and ((t * wh) % 8 == 0 or t == hh)]

    def footprint(t):
        m = t * wh
        x_blk = m * 4 * c * itemsize_in            # (1, t, 2, wh, 2C) input block
        out_blk = m * c2out * itemsize_out         # (1, m, 2C) output block
        ss_blk = 2 * m * 4                         # scale + shift blocks (f32)
        temps = (4 * m * c2 + m * c2out) * 4       # x_top/x_bot/y_top/y_bot + f32 acc
        weights = 2 * (c2 * c2out) * 2             # two bf16 weight mats
        return 2 * (x_blk + out_blk + ss_blk) + temps + 2 * weights

    fitting = [t for t in cands if footprint(t) <= target_bytes]
    return max(fitting) if fitting else min(cands)


# ---------------------------------------------------------------------------
# Fused single-call path: merge + GroupNorm(1) + token affine + 4C->2C reduce,
# whole sample resident in VMEM (x read from HBM exactly once).
# ---------------------------------------------------------------------------
def _fused_kernel(x_ref, gamma_ref, beta_ref, wtop_ref, wbot_ref, o_ref, *, eps):
    _, hh, _, wh, c2 = x_ref.shape           # block: (1, H/2, 2, W/2, 2C)
    m = hh * wh

    # dh=0 rows carry [x0 | x2] channels, dh=1 rows carry [x1 | x3] channels.
    x_top = x_ref[0, :, 0, :, :].astype(jnp.float32).reshape(m, c2)
    x_bot = x_ref[0, :, 1, :, :].astype(jnp.float32).reshape(m, c2)

    count = 2.0 * m * c2
    mean = (jnp.sum(x_top, keepdims=True) + jnp.sum(x_bot, keepdims=True)) / count  # (1,1)
    dt = x_top - mean
    db = x_bot - mean
    var = (jnp.sum(dt * dt, keepdims=True) + jnp.sum(db * db, keepdims=True)) / count
    rstd = jax.lax.rsqrt(var + eps)                                                 # (1,1)

    # Fold norm + per-token affine into a single scale/shift (2 VPU ops / element).
    scale = gamma_ref[...] * rstd             # (m, 1)
    shift = beta_ref[...] - mean * scale      # (m, 1)
    y_top = x_top * scale + shift
    y_bot = x_bot * scale + shift

    mm_dtype = wtop_ref.dtype                 # bf16 operands, f32 accumulation on the MXU
    out = jnp.dot(y_top.astype(mm_dtype), wtop_ref[...],
                  preferred_element_type=jnp.float32)
    out = out + jnp.dot(y_bot.astype(mm_dtype), wbot_ref[...],
                        preferred_element_type=jnp.float32)
    o_ref[0] = out.astype(o_ref.dtype)


# ---------------------------------------------------------------------------
# Two-pass path, pass 1: per-sample GroupNorm(group=1) partial statistics.
# ---------------------------------------------------------------------------
def _stats_kernel(x_ref, sum_ref, sq_ref):
    @pl.when(pl.program_id(2) == 0)
    def _():
        sum_ref[...] = jnp.zeros_like(sum_ref)
        sq_ref[...] = jnp.zeros_like(sq_ref)

    xb = x_ref[0].astype(jnp.float32)                           # (TL, C)
    sum_ref[0, 0] += jnp.sum(xb, axis=0, keepdims=True)         # (1, C)
    sq_ref[0, 0] += jnp.sum(xb * xb, axis=0, keepdims=True)     # (1, C)


def _groupnorm_stats(x, *, eps, stats_tile=None):
    """Returns per-sample (mean, rstd) as (B,) float32 arrays."""
    B, L, C = x.shape
    itemsize = jnp.dtype(x.dtype).itemsize
    tl = stats_tile if stats_tile is not None else _pick_stats_tile(L, C, itemsize)
    assert L % tl == 0, "stats tile must divide H*W"
    n_tiles = L // tl
    lo = _pick_outer_split(n_tiles, B)
    li = n_tiles // lo

    flops = int(3 * B * L * C)
    bytes_acc = int(B * L * C * itemsize + 2 * B * lo * C * 4)

    sum_p, sq_p = pl.pallas_call(
        _stats_kernel,
        out_shape=(jax.ShapeDtypeStruct((B, lo, 1, C), jnp.float32),
                   jax.ShapeDtypeStruct((B, lo, 1, C), jnp.float32)),
        grid_spec=pltpu.PrefetchScalarGridSpec(
            num_scalar_prefetch=0,
            grid=(B, lo, li),
            in_specs=[pl.BlockSpec((1, tl, C), lambda b, o, i: (b, o * li + i, 0))],
            out_specs=(pl.BlockSpec((1, 1, 1, C), lambda b, o, i: (b, o, 0, 0)),
                       pl.BlockSpec((1, 1, 1, C), lambda b, o, i: (b, o, 0, 0))),
        ),
        compiler_params=pltpu.CompilerParams(
            dimension_semantics=("parallel", "parallel", "arbitrary"),
            vmem_limit_bytes=_VMEM_LIMIT_BYTES),
        cost_estimate=pl.CostEstimate(flops=flops, transcendentals=0,
                                      bytes_accessed=bytes_acc),
    )(x)

    count = float(L * C)
    s = jnp.sum(sum_p, axis=(1, 2, 3))                          # (B,)
    sq = jnp.sum(sq_p, axis=(1, 2, 3))                          # (B,)
    mean = s / count
    var = jnp.maximum(sq / count - mean * mean, 0.0)            # biased var, like nn.GroupNorm
    rstd = jax.lax.rsqrt(var + eps)
    return mean, rstd


# ---------------------------------------------------------------------------
# Two-pass path, pass 2: 2x2 merge (via BlockSpec view) + y = x*scale + shift
# + 4C->2C reduction as two bf16 MXU matmuls with f32 accumulation.
# ---------------------------------------------------------------------------
def _merge_norm_reduce_kernel(x_ref, scale_ref, shift_ref, wtop_ref, wbot_ref, o_ref):
    _, tr, _, wh, c2 = x_ref.shape           # block: (1, TR, 2, W/2, 2C)
    m = tr * wh

    # NOTE: if W/2 % 8 != 0 this reshape forces a sublane relayout copy (perf only).
    x_top = x_ref[0, :, 0, :, :].astype(jnp.float32).reshape(m, c2)   # [x0 | x2]
    x_bot = x_ref[0, :, 1, :, :].astype(jnp.float32).reshape(m, c2)   # [x1 | x3]

    scale = scale_ref[0]                     # (m, 1) f32 = rstd * gamma (per merged token)
    shift = shift_ref[0]                     # (m, 1) f32 = beta - mean * rstd * gamma
    y_top = x_top * scale + shift
    y_bot = x_bot * scale + shift

    mm_dtype = wtop_ref.dtype
    out = jnp.dot(y_top.astype(mm_dtype), wtop_ref[...],
                  preferred_element_type=jnp.float32)
    out = out + jnp.dot(y_bot.astype(mm_dtype), wbot_ref[...],
                        preferred_element_type=jnp.float32)
    o_ref[0] = out.astype(o_ref.dtype)


# ---------------------------------------------------------------------------
# Wrapper
# ---------------------------------------------------------------------------
def patch_merging(x, gamma, beta, w_reduction, *, input_resolution, eps=1e-5,
                  row_tile=None, stats_tile=None, matmul_dtype=jnp.bfloat16,
                  force_two_pass=False, fused_vmem_budget=16 << 20):
    """PatchMerging forward.

    x:            (B, H*W, C)
    gamma, beta:  (4*C,) GroupNorm affine.  As in PyTorch, nn.GroupNorm applied to the
                  merged (B, H/2*W/2, 4*C) tensor indexes these along dim 1, so the
                  module requires H/2*W/2 == 4*C.
    w_reduction:  (4*C, 2*C)  == nn.Linear(4C, 2C, bias=False).weight.T
    returns:      (B, H/2*W/2, 2*C) in x.dtype
    """
    H, W = input_resolution
    B, L, C = x.shape
    assert L == H * W, "input feature has wrong size"
    assert H % 2 == 0 and W % 2 == 0, "H and W must be even"
    Hh, Wh = H // 2, W // 2
    L_out = Hh * Wh
    C2, C4, C2out = 2 * C, 4 * C, 2 * C
    assert gamma.shape == (C4,) and beta.shape == (C4,)
    assert w_reduction.shape == (C4, C2out)
    # Same runnability constraint as PyTorch nn.GroupNorm(1, 4*dim) on a (B, L_out, 4*dim) tensor.
    assert L_out == C4, "GroupNorm(1, 4*dim) on the merged tensor requires H/2*W/2 == 4*dim"

    # Free (metadata-only) view exposing the 2x2 structure:
    #   x5[b, hh, dh, wh, dw*C + c] == x[b, (2*hh+dh)*W + (2*wh+dw), c]
    x5 = x.reshape(B, Hh, 2, Wh, C2)

    # Row-permute the reduction weight so the kernel's natural channel order
    # (top = [x0|x2], bottom = [x1|x3]) multiplies the right rows of the original
    # (x0|x1|x2|x3)-ordered matrix.
    w0 = w_reduction[0 * C:1 * C]
    w1 = w_reduction[1 * C:2 * C]
    w2 = w_reduction[2 * C:3 * C]
    w3 = w_reduction[3 * C:4 * C]
    w_top = jnp.concatenate([w0, w2], axis=0).astype(matmul_dtype)   # (2C, 2C)
    w_bot = jnp.concatenate([w1, w3], axis=0).astype(matmul_dtype)   # (2C, 2C)

    itemsize = jnp.dtype(x.dtype).itemsize
    flops_mm = int(2 * B * L_out * C4 * C2out)

    # Per-grid-step footprint of the fused path (double-buffered blocks + f32 temps).
    fused_fp = (2 * (L * C * itemsize)                     # x sample block (x2 buffers)
                + 2 * (L_out * C2out * itemsize)           # output block (x2 buffers)
                + (4 * L_out * C2 + L_out * C2out) * 4     # f32 temporaries
                + 2 * 2 * (C2 * C2out * 2)                 # bf16 weights (x2 buffers)
                + 2 * 2 * L_out * 4)                       # gamma/beta (x2 buffers)
    use_fused = (not force_two_pass) and fused_fp <= fused_vmem_budget

    if use_fused:
        gamma2 = gamma.reshape(L_out, 1).astype(jnp.float32)
        beta2 = beta.reshape(L_out, 1).astype(jnp.float32)
        bytes_acc = int(B * L * C * itemsize + B * L_out * C2out * itemsize
                        + 2 * C2 * C2out * 2)
        return pl.pallas_call(
            functools.partial(_fused_kernel, eps=eps),
            out_shape=jax.ShapeDtypeStruct((B, L_out, C2out), x.dtype),
            grid_spec=pltpu.PrefetchScalarGridSpec(
                num_scalar_prefetch=0,
                grid=(B,),
                in_specs=[
                    pl.BlockSpec((1, Hh, 2, Wh, C2), lambda b: (b, 0, 0, 0, 0)),
                    pl.BlockSpec((L_out, 1), lambda b: (0, 0)),          # gamma (per token)
                    pl.BlockSpec((L_out, 1), lambda b: (0, 0)),          # beta  (per token)
                    pl.BlockSpec((C2, C2out), lambda b: (0, 0)),         # w_top (bf16)
                    pl.BlockSpec((C2, C2out), lambda b: (0, 0)),         # w_bot (bf16)
                ],
                out_specs=pl.BlockSpec((1, L_out, C2out), lambda b: (b, 0, 0)),
            ),
            compiler_params=pltpu.CompilerParams(
                dimension_semantics=("parallel",),
                vmem_limit_bytes=_VMEM_LIMIT_BYTES),
            cost_estimate=pl.CostEstimate(flops=flops_mm + int(8 * B * L * C),
                                          transcendentals=int(B),
                                          bytes_accessed=bytes_acc),
        )(x5, gamma2, beta2, w_top, w_bot)

    # --- pass 1: per-sample mean / rstd --------------------------------------
    mean, rstd = _groupnorm_stats(x, eps=eps, stats_tile=stats_tile)     # (B,), (B,)

    # Tiny (B, L_out) precompute: fold norm + per-token affine into scale/shift.
    g = gamma.astype(jnp.float32)[None, :]                               # (1, L_out)
    bt = beta.astype(jnp.float32)[None, :]
    scale = (rstd[:, None] * g).reshape(B, L_out, 1)
    shift = (bt - mean[:, None] * rstd[:, None] * g).reshape(B, L_out, 1)

    # --- pass 2: fused merge + norm + reduction -------------------------------
    tr = row_tile if row_tile is not None else _pick_merge_tile(
        Hh, Wh, C, itemsize, itemsize)
    assert Hh % tr == 0, "row_tile must divide H//2"
    m = tr * Wh
    assert m % 8 == 0 or tr == Hh, "merged-row tile must give a multiple-of-8 block"

    bytes_acc2 = int(B * L * C * itemsize + B * L_out * C2out * itemsize
                     + 2 * C2 * C2out * 2 + 2 * B * L_out * 4)
    return pl.pallas_call(
        _merge_norm_reduce_kernel,
        out_shape=jax.ShapeDtypeStruct((B, L_out, C2out), x.dtype),
        grid_spec=pltpu.PrefetchScalarGridSpec(
            num_scalar_prefetch=0,
            grid=(B, Hh // tr),
            in_specs=[
                pl.BlockSpec((1, tr, 2, Wh, C2), lambda b, r: (b, r, 0, 0, 0)),
                pl.BlockSpec((1, m, 1), lambda b, r: (b, r, 0)),          # scale (per token)
                pl.BlockSpec((1, m, 1), lambda b, r: (b, r, 0)),          # shift (per token)
                pl.BlockSpec((C2, C2out), lambda b, r: (0, 0)),           # w_top (bf16)
                pl.BlockSpec((C2, C2out), lambda b, r: (0, 0)),           # w_bot (bf16)
            ],
            out_specs=pl.BlockSpec((1, m, C2out), lambda b, r: (b, r, 0)),
        ),
        compiler_params=pltpu.CompilerParams(
            dimension_semantics=("parallel", "parallel"),
            vmem_limit_bytes=_VMEM_LIMIT_BYTES),
        cost_estimate=pl.CostEstimate(flops=flops_mm + int(2 * B * L * C),
                                      transcendentals=0,
                                      bytes_accessed=bytes_acc2),
    )(x5, scale, shift, w_top, w_bot)


# ---------------------------------------------------------------------------
# Pure-JAX reference mirroring the PyTorch forward
# ---------------------------------------------------------------------------
def _ref_patch_merging(x, gamma, beta, w_reduction, *, input_resolution, eps=1e-5,
                       matmul_dtype=None):
    H, W = input_resolution
    B, L, C = x.shape
    xi = x.reshape(B, H, W, C)
    x0 = xi[:, 0::2, 0::2, :]
    x1 = xi[:, 1::2, 0::2, :]
    x2 = xi[:, 0::2, 1::2, :]
    x3 = xi[:, 1::2, 1::2, :]
    merged = jnp.concatenate([x0, x1, x2, x3], axis=-1).reshape(B, -1, 4 * C)
    mf = merged.astype(jnp.float32)
    mu = jnp.mean(mf, axis=(1, 2), keepdims=True)
    var = jnp.mean(jnp.square(mf - mu), axis=(1, 2), keepdims=True)
    y = (mf - mu) * jax.lax.rsqrt(var + eps)
    # nn.GroupNorm affine: indexed along dim 1 of the (B, L_out, 4C) tensor.
    y = y * gamma[None, :, None].astype(jnp.float32) + beta[None, :, None].astype(jnp.float32)
    w = w_reduction
    if matmul_dtype is not None:
        y = y.astype(matmul_dtype)
        w = w.astype(matmul_dtype)
    out = jnp.matmul(y, w, preferred_element_type=jnp.float32)
    return out.astype(x.dtype)


if __name__ == "__main__":
    # Small shapes consistent with the module; nn.GroupNorm(1, 4*dim) on the merged
    # (B, H/2*W/2, 4*dim) tensor requires H/2*W/2 == 4*dim  ->  64 == 64 here.
    B, H, W, dim = 2, 16, 16, 16

    key = jax.random.PRNGKey(0)
    kx, kw, kg, kb = jax.random.split(key, 4)
    x = jax.random.normal(kx, (B, H * W, dim), jnp.float32)
    gamma = 1.0 + 0.1 * jax.random.normal(kg, (4 * dim,), jnp.float32)
    beta = 0.05 * jax.random.normal(kb, (4 * dim,), jnp.float32)
    w_red = jax.random.normal(kw, (4 * dim, 2 * dim), jnp.float32) * 0.05

    # Fused single-call path (default dispatch at these sizes).
    fwd_fused = jax.jit(functools.partial(patch_merging, input_resolution=(H, W)))
    out_fused = jax.block_until_ready(fwd_fused(x, gamma, beta, w_red))
    assert out_fused.shape == (B, (H // 2) * (W // 2), 2 * dim)

    # Two-pass tiled path (forced, exercising both grids with multiple tiles).
    fwd_2pass = jax.jit(functools.partial(patch_merging, input_resolution=(H, W),
                                          force_two_pass=True, row_tile=2, stats_tile=64))
    out_2pass = jax.block_until_ready(fwd_2pass(x, gamma, beta, w_red))
    assert out_2pass.shape == out_fused.shape

    # Check vs a reference using the same bf16-operand / f32-accumulation matmul policy,
    # and a looser check vs the full-f32 reference (bounds the bf16 quantization error).
    ref_bf16 = _ref_patch_merging(x, gamma, beta, w_red, input_resolution=(H, W),
                                  matmul_dtype=jnp.bfloat16)
    ref_f32 = _ref_patch_merging(x, gamma, beta, w_red, input_resolution=(H, W))
    for name, out in (("fused", out_fused), ("two_pass", out_2pass)):
        assert jnp.allclose(out, ref_bf16, atol=1e-2, rtol=1e-2), f"{name}: mismatch vs bf16 ref"
        assert jnp.allclose(out, ref_f32, atol=5e-2, rtol=5e-2), f"{name}: mismatch vs f32 ref"

    print("KERNEL_OK")
</pallas_src>

<mosaic_0001>
module attributes {stable_mosaic.version = 11 : i64} {
  func.func @_fused_kernel(%arg0: i32, %arg1: memref<1x8x2x8x32xf32, #tpu.memory_space<vmem>>, %arg2: memref<64x1xf32, #tpu.memory_space<vmem>>, %arg3: memref<64x1xf32, #tpu.memory_space<vmem>>, %arg4: memref<32x32xbf16, #tpu.memory_space<vmem>>, %arg5: memref<32x32xbf16, #tpu.memory_space<vmem>>, %arg6: memref<1x64x32xf32, #tpu.memory_space<vmem>>) attributes {dimension_semantics = [#tpu.dimension_semantics<parallel>], iteration_bounds = array<i64: 2>, scalar_prefetch = 0 : i64, scratch_operands = 0 : i64, tpu.core_type = #tpu.core_type<tc>, window_params = [{transform_indices = @transform_0, window_bounds = array<i64: 1, 8, 2, 8, 32>}, {pipeline_mode = #tpu.pipeline_mode<synchronous>, transform_indices = @transform_1, window_bounds = array<i64: 64, 1>}, {pipeline_mode = #tpu.pipeline_mode<synchronous>, transform_indices = @transform_2, window_bounds = array<i64: 64, 1>}, {pipeline_mode = #tpu.pipeline_mode<synchronous>, transform_indices = @transform_3, window_bounds = array<i64: 32, 32>}, {pipeline_mode = #tpu.pipeline_mode<synchronous>, transform_indices = @transform_4, window_bounds = array<i64: 32, 32>}, {transform_indices = @transform_5, window_bounds = array<i64: 1, 64, 32>}]} {
    %c0 = arith.constant 0 : index
    %c0_0 = arith.constant 0 : index
    %c0_1 = arith.constant 0 : index
    %c0_2 = arith.constant 0 : index
    %c0_3 = arith.constant 0 : index
    %0 = vector.load %arg1[%c0, %c0_0, %c0_1, %c0_2, %c0_3] : memref<1x8x2x8x32xf32, #tpu.memory_space<vmem>>, vector<1x8x1x8x32xf32>
    %1 = vector.shape_cast %0 : vector<1x8x1x8x32xf32> to vector<8x8x32xf32>
    %2 = vector.shape_cast %1 : vector<8x8x32xf32> to vector<64x32xf32>
    %c0_4 = arith.constant 0 : index
    %c0_5 = arith.constant 0 : index
    %c1 = arith.constant 1 : index
    %c0_6 = arith.constant 0 : index
    %c0_7 = arith.constant 0 : index
    %3 = vector.load %arg1[%c0_4, %c0_5, %c1, %c0_6, %c0_7] : memref<1x8x2x8x32xf32, #tpu.memory_space<vmem>>, vector<1x8x1x8x32xf32>
    %4 = vector.shape_cast %3 : vector<1x8x1x8x32xf32> to vector<8x8x32xf32>
    %5 = vector.shape_cast %4 : vector<8x8x32xf32> to vector<64x32xf32>
    %6 = vector.shape_cast %2 : vector<64x32xf32> to vector<1x64x32xf32>
    %cst = arith.constant dense<0.000000e+00> : vector<1xf32>
    %7 = vector.multi_reduction <add>, %6, %cst [1, 2] : vector<1x64x32xf32> to vector<1xf32>
    %8 = vector.shape_cast %7 : vector<1xf32> to vector<1x1x1xf32>
    %9 = vector.extract %8[0, 0, 0] : f32 from vector<1x1x1xf32>
    %10 = vector.broadcast %9 : f32 to vector<1x1xf32>
    %11 = vector.shape_cast %5 : vector<64x32xf32> to vector<1x64x32xf32>
    %cst_8 = arith.constant dense<0.000000e+00> : vector<1xf32>
    %12 = vector.multi_reduction <add>, %11, %cst_8 [1, 2] : vector<1x64x32xf32> to vector<1xf32>
    %13 = vector.shape_cast %12 : vector<1xf32> to vector<1x1x1xf32>
    %14 = vector.extract %13[0, 0, 0] : f32 from vector<1x1x1xf32>
    %15 = vector.broadcast %14 : f32 to vector<1x1xf32>
    %16 = arith.addf %10, %15 : vector<1x1xf32>
    %cst_9 = arith.constant 4.096000e+03 : f32
    %17 = vector.broadcast %cst_9 : f32 to vector<1x1xf32>
    %18 = arith.divf %16, %17 : vector<1x1xf32>
    %19 = vector.broadcast %18 : vector<1x1xf32> to vector<64x32xf32>
    %20 = arith.subf %2, %19 : vector<64x32xf32>
    %21 = vector.broadcast %18 : vector<1x1xf32> to vector<64x32xf32>
    %22 = arith.subf %5, %21 : vector<64x32xf32>
    %23 = arith.mulf %20, %20 : vector<64x32xf32>
    %24 = vector.shape_cast %23 : vector<64x32xf32> to vector<1x64x32xf32>
    %cst_10 = arith.constant dense<0.000000e+00> : vector<1xf32>
    %25 = vector.multi_reduction <add>, %24, %cst_10 [1, 2] : vector<1x64x32xf32> to vector<1xf32>
    %26 = vector.shape_cast %25 : vector<1xf32> to vector<1x1x1xf32>
    %27 = vector.extract %26[0, 0, 0] : f32 from vector<1x1x1xf32>
    %28 = vector.broadcast %27 : f32 to vector<1x1xf32>
    %29 = arith.mulf %22, %22 : vector<64x32xf32>
    %30 = vector.shape_cast %29 : vector<64x32xf32> to vector<1x64x32xf32>
    %cst_11 = arith.constant dense<0.000000e+00> : vector<1xf32>
    %31 = vector.multi_reduction <add>, %30, %cst_11 [1, 2] : vector<1x64x32xf32> to vector<1xf32>
    %32 = vector.shape_cast %31 : vector<1xf32> to vector<1x1x1xf32>
    %33 = vector.extract %32[0, 0, 0] : f32 from vector<1x1x1xf32>
    %34 = vector.broadcast %33 : f32 to vector<1x1xf32>
    %35 = arith.addf %28, %34 : vector<1x1xf32>
    %cst_12 = arith.constant 4.096000e+03 : f32
    %36 = vector.broadcast %cst_12 : f32 to vector<1x1xf32>
    %37 = arith.divf %35, %36 : vector<1x1xf32>
    %cst_13 = arith.constant 9.99999974E-6 : f32
    %38 = vector.broadcast %cst_13 : f32 to vector<1x1xf32>
    %39 = arith.addf %37, %38 : vector<1x1xf32>
    %40 = math.rsqrt %39 : vector<1x1xf32>
    %c0_14 = arith.constant 0 : index
    %c0_15 = arith.constant 0 : index
    %41 = vector.load %arg2[%c0_14, %c0_15] : memref<64x1xf32, #tpu.memory_space<vmem>>, vector<64x1xf32>
    %42 = vector.broadcast %40 : vector<1x1xf32> to vector<64x1xf32>
    %43 = arith.mulf %41, %42 : vector<64x1xf32>
    %c0_16 = arith.constant 0 : index
    %c0_17 = arith.constant 0 : index
    %44 = vector.load %arg3[%c0_16, %c0_17] : memref<64x1xf32, #tpu.memory_space<vmem>>, vector<64x1xf32>
    %45 = vector.broadcast %18 : vector<1x1xf32> to vector<64x1xf32>
    %46 = arith.mulf %45, %43 : vector<64x1xf32>
    %47 = arith.subf %44, %46 : vector<64x1xf32>
    %48 = vector.broadcast %43 : vector<64x1xf32> to vector<64x32xf32>
    %49 = arith.mulf %2, %48 : vector<64x32xf32>
    %50 = vector.broadcast %47 : vector<64x1xf32> to vector<64x32xf32>
    %51 = arith.addf %49, %50 : vector<64x32xf32>
    %52 = vector.broadcast %43 : vector<64x1xf32> to vector<64x32xf32>
    %53 = arith.mulf %5, %52 : vector<64x32xf32>
    %54 = vector.broadcast %47 : vector<64x1xf32> to vector<64x32xf32>
    %55 = arith.addf %53, %54 : vector<64x32xf32>
    %56 = arith.truncf %51 : vector<64x32xf32> to vector<64x32xbf16>
    %c0_18 = arith.constant 0 : index
    %c0_19 = arith.constant 0 : index
    %57 = vector.load %arg4[%c0_18, %c0_19] : memref<32x32xbf16, #tpu.memory_space<vmem>>, vector<32x32xbf16>
    %cst_20 = arith.constant dense<0.000000e+00> : vector<64x32xf32>
    %58 = tpu.matmul %56, %57, %cst_20 {dimension_numbers = #tpu.dot_dimension_numbers<[1], [0], [0], [1], [0, 0, 1, 1], [], []>} : vector<64x32xbf16>, vector<32x32xbf16>, vector<64x32xf32> -> vector<64x32xf32>
    %59 = arith.truncf %55 : vector<64x32xf32> to vector<64x32xbf16>
    %c0_21 = arith.constant 0 : index
    %c0_22 = arith.constant 0 : index
    %60 = vector.load %arg5[%c0_21, %c0_22] : memref<32x32xbf16, #tpu.memory_space<vmem>>, vector<32x32xbf16>
    %cst_23 = arith.constant dense<0.000000e+00> : vector<64x32xf32>
    %61 = tpu.matmul %59, %60, %cst_23 {dimension_numbers = #tpu.dot_dimension_numbers<[1], [0], [0], [1], [0, 0, 1, 1], [], []>} : vector<64x32xbf16>, vector<32x32xbf16>, vector<64x32xf32> -> vector<64x32xf32>
    %62 = arith.addf %58, %61 : vector<64x32xf32>
    %c0_24 = arith.constant 0 : index
    %c0_25 = arith.constant 0 : index
    %c0_26 = arith.constant 0 : index
    %63 = vector.load %arg6[%c0_24, %c0_25, %c0_26] : memref<1x64x32xf32, #tpu.memory_space<vmem>>, vector<1x64x32xf32>
    %64 = vector.shape_cast %63 : vector<1x64x32xf32> to vector<64x32xf32>
    %65 = vector.shape_cast %62 : vector<64x32xf32> to vector<1x64x32xf32>
    tpu.vector_store %arg6[%c0_24, %c0_25, %c0_26], %65 {strides = array<i32>} : memref<1x64x32xf32, #tpu.memory_space<vmem>>, vector<1x64x32xf32>,
    return
  }
  func.func @transform_0(%arg0: i32) -> (i32, i32, i32, i32, i32) {
    %c0_i32 = arith.constant 0 : i32
    %c0_i32_0 = arith.constant 0 : i32
    %c0_i32_1 = arith.constant 0 : i32
    %c0_i32_2 = arith.constant 0 : i32
    %c0_i32_3 = arith.constant 0 : i32
    return %arg0, %c0_i32, %c0_i32_0, %c0_i32_1, %c0_i32_2 : i32, i32, i32, i32, i32
  }
  func.func @transform_1(%arg0: i32) -> (i32, i32) {
    %c0_i32 = arith.constant 0 : i32
    %c0_i32_0 = arith.constant 0 : i32
    %c0_i32_1 = arith.constant 0 : i32
    return %c0_i32, %c0_i32_0 : i32, i32
  }
  func.func @transform_2(%arg0: i32) -> (i32, i32) {
    %c0_i32 = arith.constant 0 : i32
    %c0_i32_0 = arith.constant 0 : i32
    %c0_i32_1 = arith.constant 0 : i32
    return %c0_i32, %c0_i32_0 : i32, i32
  }
  func.func @transform_3(%arg0: i32) -> (i32, i32) {
    %c0_i32 = arith.constant 0 : i32
    %c0_i32_0 = arith.constant 0 : i32
    %c0_i32_1 = arith.constant 0 : i32
    return %c0_i32, %c0_i32_0 : i32, i32
  }
  func.func @transform_4(%arg0: i32) -> (i32, i32) {
    %c0_i32 = arith.constant 0 : i32
    %c0_i32_0 = arith.constant 0 : i32
    %c0_i32_1 = arith.constant 0 : i32
    return %c0_i32, %c0_i32_0 : i32, i32
  }
  func.func @transform_5(%arg0: i32) -> (i32, i32, i32) {
    %c0_i32 = arith.constant 0 : i32
    %c0_i32_0 = arith.constant 0 : i32
    %c0_i32_1 = arith.constant 0 : i32
    return %arg0, %c0_i32, %c0_i32_0 : i32, i32, i32
  }
}

</mosaic_0001>

<bundles_post_ra>
// kernel: patch_merging.1
= control target key start
LH: loop header
LB: loop body
LE: loop exit
PB: predicated region body
PF: predicated region fallthrough
CT: control target
= control target key end

     0   :  { %s925_s18 = smov 0   ;;  %s1188_s0 = inlined_call_operand.vmem [shape: f32[2,8,2,8,32], index: 0, kind: input, shape index: {}]   ;;  %s1189_s1 = inlined_call_operand.vmem [shape: f32[64,1], index: 1, kind: input, shape index: {}]   ;;  %s1190_s2 = inlined_call_operand.vmem [shape: f32[64,1], index: 2, kind: input, shape index: {}]   ;;  %s1191_s3 = inlined_call_operand.vmem [shape: bf16[32,32], index: 3, kind: input, shape index: {}]   ;;  %s1192_s4 = inlined_call_operand.vmem [shape: bf16[32,32], index: 4, kind: input, shape index: {}]   ;;  %s1193_s5 = inlined_call_operand.vmem [shape: f32[2,64,32], index: 5, kind: output, shape index: {}]  }
   0x1 LB: > { %s792_s19 = sadd.s32 4294967295, %s892_s18   ;;  %p796_p0 = scmp.ge.s32.totalorder %s892_s18, 1  ;;  %s892_s18 = sphi %s925_s18, %s15_s18  }
   0x2   : > { %p187_p1 = scmp.lt.s32.totalorder %s892_s18, 3 }
   0x4   : > { %p188_p2 = pnand %p796_p0, %p187_p1 }
   0x5   : > { %p215_p3 = scmp.lt.s32.totalorder (!%p188_p2), %s792_s19, 1 }
   0x6   : > { %191 = sbr.rel (%p188_p2) target bundleno = 855 (0x357), region = 40 }
   0xb   : > { %s1195_s19 = smov (!%p215_p3, %s792_s19), 1  ;;  %vm243_vm0 = vcmask 261120  }
   0xc   : > { %s823_s20 = sshll.u32 %s1195_s19, 7  ;;  %s824_s22 = sshll.u32 %s1195_s19, 6 }
   0xd   : > { %s939_s23 = scalar_lea.vmem %s1188_s0, %s823_s20 }
   0xe   : > { %v942_v0 = vld [vmem:[%s939_s23] sm:$0xff]  ;;  %v945_v1 = vld [vmem:[%s939_s23 + $0x10] sm:$0xff]  ;;  %v963_v9 = vld [vmem:[%s939_s23 + $0x8] sm:$0xff] }
   0xf   : > { %v948_v2 = vld [vmem:[%s939_s23 + $0x20] sm:$0xff]  ;;  %v951_v3 = vld [vmem:[%s939_s23 + $0x30] sm:$0xff]  ;;  %v244_v4 = vsel %vm243_vm0, %v942_v0, 0.0  ;;  %v245_v5 = vsel %vm243_vm0, %v945_v1, 0.0  ;;  %v968_v11 = vld [vmem:[%s939_s23 + $0x18] sm:$0xff]  ;;  %v269_v14 = vsel %vm243_vm0, %v963_v9, 0.0 }
  0x10   : > { %v247_v6 = vsel %vm243_vm0, %v948_v2, 0.0  ;;  %v960_v7 = vld [vmem:[%s939_s23 + $0x40] sm:$0xff]  ;;  %v246_v8 = vadd.f32 %v245_v5, %v244_v4  ;;  %v249_v10 = vsel %vm243_vm0, %v951_v3, 0.0  ;;  %v971_v12 = vld [vmem:[%s939_s23 + $0x28] sm:$0xff]  ;;  %v974_v13 = vld [vmem:[%s939_s23 + $0x38] sm:$0xff]  ;;  %v270_v17 = vsel %vm243_vm0, %v968_v11, 0.0 }
  0x11   : > { %v979_v15 = vld [vmem:[%s939_s23 + $0x50] sm:$0xff]  ;;  %v272_v18 = vsel %vm243_vm0, %v971_v12, 0.0  ;;  %v251_v19 = vsel %vm243_vm0, %v960_v7, 0.0  ;;  %v988_v20 = vld [vmem:[%s939_s23 + $0x48] sm:$0xff]  ;;  %v271_v21 = vadd.f32 %v270_v17, %v269_v14  ;;  %v991_v22 = vld [vmem:[%s939_s23 + $0x60] sm:$0xff]  ;;  %v274_v24 = vsel %vm243_vm0, %v974_v13, 0.0 }
  0x12   : > { %v248_v16 = vadd.f32 %v247_v6, %v246_v8  ;;  %v253_v25 = vsel %vm243_vm0, %v979_v15, 0.0  ;;  %v998_v26 = vld [vmem:[%s939_s23 + $0x58] sm:$0xff]  ;;  %v1001_v28 = vld [vmem:[%s939_s23 + $0x70] sm:$0xff]  ;;  %v276_v30 = vsel %vm243_vm0, %v988_v20, 0.0  ;;  %v255_v31 = vsel %vm243_vm0, %v991_v22, 0.0  ;;  %v1008_v32 = vld [vmem:[%s939_s23 + $0x68] sm:$0xff] }
  0x13   : > { %v273_v27 = vadd.f32 %v272_v18, %v271_v21  ;;  %v278_v35 = vsel %vm243_vm0, %v998_v26, 0.0  ;;  %v257_v36 = vsel %vm243_vm0, %v1001_v28, 0.0  ;;  %v1015_v37 = vld [vmem:[%s939_s23 + $0x78] sm:$0xff]  ;;  %v280_v40 = vsel %vm243_vm0, %v1008_v32, 0.0 }
  0x14   : > { %v250_v23 = vadd.f32 %v249_v10, %v248_v16  ;;  %v282_v43 = vsel %vm243_vm0, %v1015_v37, 0.0 }
  0x15   : > { %v275_v33 = vadd.f32 %v274_v24, %v273_v27 }
  0x16   : > { %v252_v29 = vadd.f32 %v251_v19, %v250_v23 }
  0x17   : > { %v277_v38 = vadd.f32 %v276_v30, %v275_v33 }
  0x18   : > { %v254_v34 = vadd.f32 %v253_v25, %v252_v29 }
  0x19   : > { %v279_v41 = vadd.f32 %v278_v35, %v277_v38 }
  0x1a   : > { %v256_v39 = vadd.f32 %v255_v31, %v254_v34 }
  0x1b   : > { %v281_v44 = vadd.f32 %v280_v40, %v279_v41 }
  0x1c   : > { %v258_v42 = vadd.f32 %v257_v36, %v256_v39 }
  0x1d   : > { %v283_v45 = vadd.f32 %v282_v43, %v281_v44 }
  0x1e   : > { %259 = vadd.xlane.f32.xlu0 %v258_v42 }
  0x22   : > { %284 = vadd.xlane.f32.xlu0 %v283_v45 }
  0xa7   : > { %v260_v46 = vpop.xlane.xlu0 %259 }
  0xa8   : > { %v261_v47 = vrot.slane %v260_v46, 4 }
  0xaa   : > { %v262_v48 = vadd.f32 %v261_v47, %v260_v46 }
  0xab   : > { %v285_v49 = vpop.xlane.xlu0 %284 }
  0xac   : > { %v263_v50 = vrot.slane %v262_v48, 2  ;;  %v286_v51 = vrot.slane %v285_v49, 4 }
  0xae   : > { %v287_v52 = vadd.f32 %v286_v51, %v285_v49  ;;  %v264_v53 = vadd.f32 %v263_v50, %v262_v48 }
  0xb0   : > { %v288_v54 = vrot.slane %v287_v52, 2  ;;  %v265_v55 = vrot.slane %v264_v53, 1 }
  0xb2   : > { %v266_v56 = vadd.f32 %v265_v55, %v264_v53  ;;  %v289_v57 = vadd.f32 %v288_v54, %v287_v52 }
  0xb4   : > { %861 = vpush %v266_v56  ;;  %v290_v58 = vrot.slane %v289_v57, 1 }
  0xb6   : > { %v291_v59 = vadd.f32 %v290_v58, %v289_v57 }
  0xb8   : > { %863 = vpush %v291_v59 }
  0xe5   : > { %s862_s24 = spop %861 }
  0xe6   : > { %v268_v60 = vstv %s862_s24 }
  0xe9   : > { %s864_s25 = spop %863 }
  0xea   : > { %v293_v61 = vstv %s864_s25  ;;  %s1167_s25 = scalar_lea.vmem %s1193_s5, %s824_s22 }
  0xeb   : > { %v294_v62 = vadd.f32 %v293_v61, %v268_v60 }
  0xed   : > { %v1021_v63 = vmul.f32 0.00024414063, %v294_v62 }
  0xef   : > { %v297_v4 = vsub.f32 %v942_v0, %v1021_v63  ;;  %v298_v5 = vsub.f32 %v945_v1, %v1021_v63  ;;  %v299_v6 = vsub.f32 %v948_v2, %v1021_v63  ;;  %v300_v8 = vsub.f32 %v951_v3, %v1021_v63 }
  0xf0   : > { %v301_v10 = vsub.f32 %v960_v7, %v1021_v63  ;;  %v302_v18 = vsub.f32 %v979_v15, %v1021_v63  ;;  %v303_v24 = vsub.f32 %v991_v22, %v1021_v63  ;;  %v305_v30 = vsub.f32 %v963_v9, %v1021_v63 }
  0xf1   : > { %v313_v14 = vmul.f32 %v297_v4, %v297_v4  ;;  %v314_v16 = vmul.f32 %v298_v5, %v298_v5  ;;  %v315_v17 = vmul.f32 %v299_v6, %v299_v6  ;;  %v316_v19 = vmul.f32 %v300_v8, %v300_v8 }
  0xf2   : > { %v317_v25 = vmul.f32 %v301_v10, %v301_v10  ;;  %v306_v31 = vsub.f32 %v968_v11, %v1021_v63  ;;  %v307_v33 = vsub.f32 %v971_v12, %v1021_v63  ;;  %v304_v34 = vsub.f32 %v1001_v28, %v1021_v63 }
  0xf3   : > { %v321_v21 = vsel %vm243_vm0, %v313_v14, 0.0  ;;  %v322_v23 = vsel %vm243_vm0, %v314_v16, 0.0  ;;  %v324_v29 = vsel %vm243_vm0, %v315_v17, 0.0  ;;  %v308_v36 = vsub.f32 %v974_v13, %v1021_v63 }
  0xf4   : > { %v323_v27 = vadd.f32 %v322_v23, %v321_v21  ;;  %v318_v38 = vmul.f32 %v302_v18, %v302_v18  ;;  %v326_v39 = vsel %vm243_vm0, %v316_v19, 0.0  ;;  %v346_v40 = vmul.f32 %v305_v30, %v305_v30 }
  0xf5   : > { %v347_v41 = vmul.f32 %v306_v31, %v306_v31  ;;  %v309_v43 = vsub.f32 %v988_v20, %v1021_v63  ;;  %v348_v44 = vmul.f32 %v307_v33, %v307_v33  ;;  %v319_v45 = vmul.f32 %v303_v24, %v303_v24 }
  0xf6   : > { %v325_v35 = vadd.f32 %v324_v29, %v323_v27  ;;  %v328_v46 = vsel %vm243_vm0, %v317_v25, 0.0  ;;  %v354_v47 = vsel %vm243_vm0, %v346_v40, 0.0  ;;  %v310_v49 = vsub.f32 %v998_v26, %v1021_v63 }
  0xf7   : > { %v349_v50 = vmul.f32 %v308_v36, %v308_v36  ;;  %v355_v51 = vsel %vm243_vm0, %v347_v41, 0.0  ;;  %v320_v52 = vmul.f32 %v304_v34, %v304_v34  ;;  %v330_v53 = vsel %vm243_vm0, %v318_v38, 0.0 }
  0xf8   : > { %v327_v42 = vadd.f32 %v326_v39, %v325_v35  ;;  %v356_v54 = vadd.f32 %v355_v51, %v354_v47  ;;  %v311_v56 = vsub.f32 %v1008_v32, %v1021_v63  ;;  %v350_v57 = vmul.f32 %v309_v43, %v309_v43  ;;  %v384_v51 = vld [vmem:[%s1189_s1 + $0x8] sm:$0xff] }
  0xf9   : > { %v357_v58 = vsel %vm243_vm0, %v348_v44, 0.0  ;;  %v332_v59 = vsel %vm243_vm0, %v319_v45, 0.0  ;;  %v312_v62 = vsub.f32 %v1015_v37, %v1021_v63  ;;  %v351_v4 = vmul.f32 %v310_v49, %v310_v49 }
  0xfa   : > { %v329_v48 = vadd.f32 %v328_v46, %v327_v42  ;;  %v358_v60 = vadd.f32 %v357_v58, %v356_v54  ;;  %v359_v5 = vsel %vm243_vm0, %v349_v50, 0.0  ;;  %v334_v6 = vsel %vm243_vm0, %v320_v52, 0.0  ;;  %v383_v52 = vld [vmem:[%s1189_s1] sm:$0xff] }
  0xfb   : > { %v352_v14 = vmul.f32 %v311_v56, %v311_v56  ;;  %v361_v16 = vsel %vm243_vm0, %v350_v57, 0.0  ;;  %v353_v18 = vmul.f32 %v312_v62, %v312_v62  ;;  %v363_v19 = vsel %vm243_vm0, %v351_v4, 0.0  ;;  %v385_v56 = vld [vmem:[%s1189_s1 + $0x10] sm:$0xff]  ;;  %v388_v57 = vld [vmem:[%s1189_s1 + $0x28] sm:$0xff] }
  0xfc   : > { %v331_v55 = vadd.f32 %v330_v53, %v329_v48  ;;  %v360_v8 = vadd.f32 %v359_v5, %v358_v60  ;;  %v894_v29 = vmov 0   ;;  %v386_v60 = vld [vmem:[%s1189_s1 + $0x18] sm:$0xff] }
  0xfd   : > { %v365_v23 = vsel %vm243_vm0, %v352_v14, 0.0  ;;  %v367_v25 = vsel %vm243_vm0, %v353_v18, 0.0  ;;  %879 = vset.pattern.permute.xlu1 %v894_v29  ;;  %878 = vset.pattern.permute.xlu0 %v894_v29  ;;  %v406_v18 = vld [vmem:[%s1190_s2 + $0x38] sm:$0xff]  ;;  %v400_v29 = vld [vmem:[%s1190_s2 + $0x8] sm:$0xff] }
  0xfe   : > { %v333_v61 = vadd.f32 %v332_v59, %v331_v55  ;;  %v362_v17 = vadd.f32 %v361_v16, %v360_v8  ;;  %v404_v8 = vld [vmem:[%s1190_s2 + $0x28] sm:$0xff] }
 0x100   : > { %v335_v10 = vadd.f32 %v334_v6, %v333_v61  ;;  %v364_v21 = vadd.f32 %v363_v19, %v362_v17  ;;  %v390_v61 = vld [vmem:[%s1189_s1 + $0x38] sm:$0xff]  ;;  %v387_v6 = vld [vmem:[%s1189_s1 + $0x20] sm:$0xff]  ;;  %v389_v17 = vld [vmem:[%s1189_s1 + $0x30] sm:$0xff] }
 0x102   : > { %336 = vadd.xlane.f32.xlu1 %v335_v10  ;;  %v366_v24 = vadd.f32 %v365_v23, %v364_v21 }
 0x104   : > { %v368_v27 = vadd.f32 %v367_v25, %v366_v24  ;;  %v399_v24 = vld [vmem:[%s1190_s2] sm:$0xff] }
 0x106   : > { %369 = vadd.xlane.f32.xlu1 %v368_v27 }
 0x18b   : > { %v337_v30 = vpop.xlane.xlu1 %336 }
 0x18c   : > { %v338_v31 = vrot.slane %v337_v30, 4 }
 0x18e   : > { %v339_v33 = vadd.f32 %v338_v31, %v337_v30 }
 0x18f   : > { %v370_v35 = vpop.xlane.xlu1 %369 }
 0x190   : > { %v340_v34 = vrot.slane %v339_v33, 2  ;;  %v371_v38 = vrot.slane %v370_v35, 4 }
 0x192   : > { %v341_v36 = vadd.f32 %v340_v34, %v339_v33  ;;  %v372_v40 = vadd.f32 %v371_v38, %v370_v35  ;;  %v401_v33 = vld [vmem:[%s1190_s2 + $0x10] sm:$0xff]  ;;  %v880_v34 = vld [vmem:[%s1192_s4 + $0x8] sm:$0xff]  }
 0x193   : > { %v881_v35 = vld [vmem:[%s1191_s3 + $0x8] sm:$0xff]   ;;  %837 = vmatprep.subr.bf16.mxu0 %v880_v34 }
 0x194   : > { %v342_v39 = vrot.slane %v341_v36, 1  ;;  %v373_v42 = vrot.slane %v372_v40, 2  ;;  %849 = vmatprep.subr.bf16.mxu1 %v881_v35  ;;  %838 = vmatpush3.bf16.msra.mxu0 %v880_v34 }
 0x195   : > { %850 = vmatpush3.bf16.msra.mxu1 %v881_v35 }
 0x196   : > { %v343_v41 = vadd.f32 %v342_v39, %v341_v36  ;;  %v374_v43 = vadd.f32 %v373_v42, %v372_v40  ;;  %v402_v39 = vld [vmem:[%s1190_s2 + $0x18] sm:$0xff]  ;;  %v882_v42 = vld [vmem:[%s1192_s4] sm:$0xff]  }
 0x197   : > { %839 = vmatprep.subr.bf16.mxu0 %v882_v42 }
 0x198   : > { %865 = vpush %v343_v41  ;;  %v375_v44 = vrot.slane %v374_v43, 1  ;;  %840 = vmatpush3.bf16.msra.mxu0 %v882_v42 }
 0x19a   : > { %v376_v45 = vadd.f32 %v375_v44, %v374_v43  ;;  %v883_v43 = vld [vmem:[%s1191_s3] sm:$0xff]  }
 0x19b   : > { %v403_v44 = vld [vmem:[%s1190_s2 + $0x20] sm:$0xff]  ;;  %851 = vmatprep.subr.bf16.mxu1 %v883_v43 }
 0x19c   : > { %867 = vpush %v376_v45  ;;  %852 = vmatpush3.bf16.msra.mxu1 %v883_v43 }
 0x1c9   : > { %s866_s26 = spop %865 }
 0x1ca   : > { %v345_v46 = vstv %s866_s26 }
 0x1cd   : > { %s868_s27 = spop %867 }
 0x1ce   : > { %v378_v47 = vstv %s868_s27 }
 0x1cf   : > { %v379_v48 = vadd.f32 %v378_v47, %v345_v46  ;;  %v405_v47 = vld [vmem:[%s1190_s2 + $0x30] sm:$0xff] }
 0x1d1   : > { %v380_v49 = vmul.f32 0.00024414063, %v379_v48 }
 0x1d3   : > { %v381_v50 = vadd.f32 1e-05, %v380_v49 }
 0x1d5   : > { %884 = vrsqrt.f32 %v381_v50 }
 0x1e2   : > { %v885_v53 = vpop.eup %884 }
 0x1e3   : > { %v392_v54 = vmul.f32 %v885_v53, %v384_v51  ;;  %v391_v55 = vmul.f32 %v885_v53, %v383_v52  ;;  %v393_v58 = vmul.f32 %v885_v53, %v385_v56  ;;  %v396_v59 = vmul.f32 %v885_v53, %v388_v57 }
 0x1e4   : > { %v394_v62 = vmul.f32 %v885_v53, %v386_v60  ;;  %v398_v4 = vmul.f32 %v885_v53, %v390_v61  ;;  %v395_v10 = vmul.f32 %v885_v53, %v387_v6  ;;  %v397_v19 = vmul.f32 %v885_v53, %v389_v17 }
 0x1e5   : > { %430 = vperm.xlu1 %879, %v392_v54   ;;  %425 = vperm.xlu0 %878, %v391_v55   ;;  %v412_v5 = vmul.f32 %v396_v59, %v1021_v63  ;;  %v407_v23 = vmul.f32 %v391_v55, %v1021_v63  ;;  %v408_v27 = vmul.f32 %v392_v54, %v1021_v63 }
 0x1e6   : > { %v414_v16 = vmul.f32 %v398_v4, %v1021_v63  ;;  %v409_v31 = vmul.f32 %v393_v58, %v1021_v63  ;;  %v410_v38 = vmul.f32 %v394_v62, %v1021_v63  ;;  %v411_v41 = vmul.f32 %v395_v10, %v1021_v63 }
 0x1e7   : > { %v420_v14 = vsub.f32 %v404_v8, %v412_v5  ;;  %v415_v25 = vsub.f32 %v399_v24, %v407_v23  ;;  %v416_v30 = vsub.f32 %v400_v29, %v408_v27  ;;  %v413_v46 = vmul.f32 %v397_v19, %v1021_v63 }
 0x1e8   : > { %v422_v21 = vsub.f32 %v406_v18, %v414_v16  ;;  %v417_v36 = vsub.f32 %v401_v33, %v409_v31  ;;  %v418_v40 = vsub.f32 %v402_v39, %v410_v38  ;;  %v419_v45 = vsub.f32 %v403_v44, %v411_v41 }
 0x1e9   : > { %435 = vperm.xlu1 %879, %v393_v58   ;;  %450 = vperm.xlu0 %878, %v396_v59   ;;  %v421_v48 = vsub.f32 %v405_v47, %v413_v46 }
 0x1ed   : > { %440 = vperm.xlu1 %879, %v394_v62   ;;  %460 = vperm.xlu0 %878, %v398_v4  }
 0x1f1   : > { %445 = vperm.xlu1 %879, %v395_v10   ;;  %498 = vperm.xlu0 %878, %v420_v14  }
 0x1f5   : > { %455 = vperm.xlu1 %879, %v397_v19   ;;  %508 = vperm.xlu0 %878, %v422_v21  }
 0x1f9   : > { %473 = vperm.xlu1 %879, %v415_v25  }
 0x1fd   : > { %478 = vperm.xlu1 %879, %v416_v30  }
 0x201   : > { %483 = vperm.xlu1 %879, %v417_v36  }
 0x205   : > { %488 = vperm.xlu1 %879, %v418_v40  }
 0x209   : > { %493 = vperm.xlu1 %879, %v419_v45  }
 0x20d   : > { %503 = vperm.xlu1 %879, %v421_v48  }
 0x260   : > { %v431_v49 = vpop.permute.xlu1 %430  ;;  %v426_v53 = vpop.permute.xlu0 %425 }
 0x261   : > { %v464_v57 = vmul.f32 %v431_v49, %v945_v1  ;;  %v520_v63 = vmul.f32 %v968_v11, %v431_v49  ;;  %v463_v58 = vmul.f32 %v426_v53, %v942_v0  ;;  %v519_v59 = vmul.f32 %v963_v9, %v426_v53 }
 0x264   : > { %v436_v50 = vpop.permute.xlu1 %435  ;;  %v451_v55 = vpop.permute.xlu0 %450 }
 0x265   : > { %v465_v1 = vmul.f32 %v436_v50, %v948_v2  ;;  %v521_v11 = vmul.f32 %v971_v12, %v436_v50  ;;  %v468_v24 = vmul.f32 %v451_v55, %v979_v15  ;;  %v524_v25 = vmul.f32 %v998_v26, %v451_v55 }
 0x268   : > { %v441_v51 = vpop.permute.xlu1 %440  ;;  %v461_v61 = vpop.permute.xlu0 %460 }
 0x269   : > { %v466_v0 = vmul.f32 %v441_v51, %v951_v3  ;;  %v522_v9 = vmul.f32 %v974_v13, %v441_v51  ;;  %v470_v15 = vmul.f32 %v461_v61, %v1001_v28  ;;  %v526_v26 = vmul.f32 %v1015_v37, %v461_v61 }
 0x26c   : > { %v446_v52 = vpop.permute.xlu1 %445  ;;  %v499_v16 = vpop.permute.xlu0 %498 }
 0x26d   : > { %v467_v27 = vmul.f32 %v446_v52, %v960_v7  ;;  %v523_v2 = vmul.f32 %v988_v20, %v446_v52  ;;  %v516_v30 = vadd.f32 %v499_v16, %v468_v24  ;;  %v532_v31 = vadd.f32 %v524_v25, %v499_v16 }
 0x270   : > { %v456_v54 = vpop.permute.xlu1 %455  ;;  %v509_v13 = vpop.permute.xlu0 %508 }
 0x271   : > { %v469_v7 = vmul.f32 %v456_v54, %v991_v22  ;;  %v525_v20 = vmul.f32 %v1008_v32, %v456_v54  ;;  %v518_v38 = vadd.f32 %v509_v13, %v470_v15  ;;  %v534_v40 = vadd.f32 %v526_v26, %v509_v13 }
 0x274   : > { %v474_v56 = vpop.permute.xlu1 %473 }
 0x275   : > { %v511_v62 = vadd.f32 %v474_v56, %v463_v58  ;;  %v527_v4 = vadd.f32 %v519_v59, %v474_v56 }
 0x278   : > { %v479_v60 = vpop.permute.xlu1 %478 }
 0x279   : > { %v512_v5 = vadd.f32 %v479_v60, %v464_v57  ;;  %v528_v6 = vadd.f32 %v520_v63, %v479_v60 }
 0x27b   : > { %v543_v8 = vpack.c.bf16 %v528_v6, %v527_v4  ;;  %v535_v10 = vpack.c.bf16 %v512_v5, %v511_v62 }
 0x27c   : > { %v484_v14 = vpop.permute.xlu1 %483 }
 0x27d   : > { %841 = vmatprep.mubr.msk.bf16.mxu0 %vm243_vm0, %v543_v8  ;;  %853 = vmatprep.mubr.msk.bf16.mxu1 %vm243_vm0, %v535_v10  ;;  %v513_v18 = vadd.f32 %v484_v14, %v465_v1  ;;  %v529_v19 = vadd.f32 %v521_v11, %v484_v14 }
 0x280   : > { %v489_v17 = vpop.permute.xlu1 %488 }
 0x281   : > { %v514_v21 = vadd.f32 %v489_v17, %v466_v0  ;;  %v530_v23 = vadd.f32 %v522_v9, %v489_v17 }
 0x283   : > { %v536_v29 = vpack.c.bf16 %v514_v21, %v513_v18  ;;  %v544_v12 = vpack.c.bf16 %v530_v23, %v529_v19 }
 0x284   : > { %v494_v3 = vpop.permute.xlu1 %493 }
 0x285   : > { %v515_v33 = vadd.f32 %v494_v3, %v467_v27  ;;  %v531_v34 = vadd.f32 %v523_v2, %v494_v3  ;;  %842 = vmatmul.mubr.msk.bf16.vlgmr.msra.gmra.mxu0 %vm243_vm0, %v544_v12  ;;  %854 = vmatmul.mubr.msk.bf16.vlgmr.msra.gmra.mxu1 %vm243_vm0, %v536_v29 }
 0x287   : > { %v537_v35 = vpack.c.bf16 %v516_v30, %v515_v33  ;;  %v545_v36 = vpack.c.bf16 %v532_v31, %v531_v34 }
 0x288   : > { %v504_v39 = vpop.permute.xlu1 %503 }
 0x289   : > { %v517_v41 = vadd.f32 %v504_v39, %v469_v7  ;;  %v533_v42 = vadd.f32 %v525_v20, %v504_v39  ;;  %845 = vmatprep.mubr.msk.bf16.mxu0 %vm243_vm0, %v545_v36  ;;  %857 = vmatprep.mubr.msk.bf16.mxu1 %vm243_vm0, %v537_v35 }
 0x28b   : > { %v538_v43 = vpack.c.bf16 %v518_v38, %v517_v41  ;;  %v546_v28 = vpack.c.bf16 %v534_v40, %v533_v42 }
 0x28d   : > { %846 = vmatmul.mubr.msk.bf16.gmra.mxu0 %vm243_vm0, %v546_v28  ;;  %858 = vmatmul.mubr.msk.bf16.gmra.mxu1 %vm243_vm0, %v538_v43 }
 0x345   : > { %v843_v22 = vpop.f32.mrf.mxu0  ;;  %v855_v32 = vpop.f32.mrf.mxu1 }
 0x346   : > { %v707_v37 = vadd.f32 %v855_v32, %v843_v22 }
 0x347   : > { %v609_v44 = vpop.f32.mrf.mxu0  ;;  %v698_v45 = vpop.f32.mrf.mxu1 }
 0x348   : > { %731 = vst.msk [vmem:[%s1167_s25 + $0x10] sm:$0xff] %vm243_vm0, %v707_v37  ;;  %v699_v46 = vadd.f32 %v698_v45, %v609_v44 }
 0x349   : > { %v844_v47 = vpop.f32.mrf.mxu0  ;;  %v856_v48 = vpop.f32.mrf.mxu1 }
 0x34a   : > { %729 = vst.msk [vmem:[%s1167_s25] sm:$0xff] %vm243_vm0, %v699_v46  ;;  %v710_v49 = vadd.f32 %v856_v48, %v844_v47 }
 0x34b   : > { %v612_v50 = vpop.f32.mrf.mxu0  ;;  %v701_v51 = vpop.f32.mrf.mxu1 }
 0x34c   : > { %732 = vst.msk [vmem:[%s1167_s25 + $0x18] sm:$0xff] %vm243_vm0, %v710_v49  ;;  %v702_v52 = vadd.f32 %v701_v51, %v612_v50 }
 0x34d   : > { %v847_v53 = vpop.f32.mrf.mxu0  ;;  %v859_v54 = vpop.f32.mrf.mxu1 }
 0x34e   : > { %730 = vst.msk [vmem:[%s1167_s25 + $0x8] sm:$0xff] %vm243_vm0, %v702_v52  ;;  %v723_v55 = vadd.f32 %v859_v54, %v847_v53 }
 0x34f   : > { %v625_v56 = vpop.f32.mrf.mxu0  ;;  %v714_v57 = vpop.f32.mrf.mxu1 }
 0x350   : > { %735 = vst.msk [vmem:[%s1167_s25 + $0x30] sm:$0xff] %vm243_vm0, %v723_v55  ;;  %v715_v63 = vadd.f32 %v714_v57, %v625_v56 }
 0x351   : > { %v848_v58 = vpop.f32.mrf.mxu0  ;;  %v860_v59 = vpop.f32.mrf.mxu1 }
 0x352   : > { %733 = vst.msk [vmem:[%s1167_s25 + $0x20] sm:$0xff] %vm243_vm0, %v715_v63  ;;  %v726_v60 = vadd.f32 %v860_v59, %v848_v58 }
 0x353   : > { %v628_v61 = vpop.f32.mrf.mxu0  ;;  %v717_v62 = vpop.f32.mrf.mxu1 }
 0x354   : > { %736 = vst.msk [vmem:[%s1167_s25 + $0x38] sm:$0xff] %vm243_vm0, %v726_v60  ;;  %v718_v4 = vadd.f32 %v717_v62, %v628_v61 }
 0x356   : > { %734 = vst.msk [vmem:[%s1167_s25 + $0x28] sm:$0xff] %vm243_vm0, %v718_v4 }
 0x357 PF: > { %s15_s18 = sadd.s32 1, %s892_s18  }
 0x358   : > { %p12_p4 = scmp.ge.s32.totalorder %s15_s18, 4  }
 0x35a   :  { %14 = sbr.rel (!%p12_p4) target bundleno = 1 (0x1), region = 71 }

</bundles_post_ra>
